<compile_context>
chip_gen: v6e
topology: v6e:2x2x1
jax: 0.10.0
libtpu: 0.0.40
codegen_flags: <defaults>
</compile_context>

<pallas_src>
import functools

import jax
import jax.numpy as jnp
from jax import lax
from jax.experimental import pallas as pl
from jax.experimental.pallas import tpu as pltpu

_LANE = 128
_NEG_BIG = -1e30  # padded-class bias; exp(_NEG_BIG - m) underflows to 0 in f32


def _round_up(x, m):
    return (x + m - 1) // m * m


def _cdiv(a, b):
    return (a + b - 1) // b


def _single_buffered(block_shape, index_map):
    """BlockSpec for a grid-invariant block with a single pipeline buffer.

    Falls back to the default (double-buffered) BlockSpec if this jax version
    does not accept `pipeline_mode=`.
    """
    try:
        return pl.BlockSpec(block_shape, index_map, pipeline_mode=pl.Buffered(1))
    except TypeError:
        return pl.BlockSpec(block_shape, index_map)


def _step_kernel(x_ref, w_ref, b_ref, lbl_ref, logits_ref, loss_ref, *,
                 batch_size, block_b, mask_rows):
    """One batch tile of classifier forward + cross-entropy.

    x_ref:      (block_b, H)      f32  input features (cast to bf16 in-kernel)
    w_ref:      (H, C_pad)        bf16 classifier weight (zero-padded cols)
    b_ref:      (1, C_pad)        f32  bias; padded cols hold -1e30
    lbl_ref:    (block_b, 1)      int32 class labels
    logits_ref: (block_b, C_pad)  f32  output logits (lane-dense)
    loss_ref:   (block_b, 1)      f32  per-example NLL (padded rows -> 0)
    """
    # ---- classifier head: bf16 MXU matmul, f32 accumulation ----------------
    x = x_ref[...].astype(jnp.bfloat16)
    logits = jnp.dot(x, w_ref[...],
                     preferred_element_type=jnp.float32) + b_ref[...]
    logits_ref[...] = logits                      # lane-dense unmasked store

    # ---- numerically stable log-softmax + CE (all f32) ---------------------
    # Padded class columns carry a -1e30 bias, so they never win the max and
    # their exp() underflows to exactly 0 -> no in-kernel class mask needed.
    m = jnp.max(logits, axis=-1, keepdims=True)
    zs = logits - m
    sumexp = jnp.sum(jnp.exp(zs), axis=-1, keepdims=True)
    lse = jnp.log(sumexp)

    col = lax.broadcasted_iota(jnp.int32, logits.shape, 1)
    labels = lbl_ref[...]                         # (block_b, 1) int32
    true_z = jnp.sum(jnp.where(col == labels, zs, 0.0),
                     axis=-1, keepdims=True)
    nll = lse - true_z                            # (block_b, 1)

    if mask_rows:
        # zero padded batch rows so the host-side mean over B is exact
        row = lax.broadcasted_iota(jnp.int32, nll.shape, 0)
        global_row = pl.program_id(0) * block_b + row
        nll = jnp.where(global_row < batch_size, nll, 0.0)
    loss_ref[...] = nll


def model_step(x, w, b, labels, *, block_b=512,
               vmem_limit_bytes=48 * 1024 * 1024):
    """Pallas-backed forward pass: returns (logits, mean_loss).

    x: (B, H) f32, w: (H, C) f32, b: (1, C) f32, labels: (B,) int.
    block_b default 512 suits v5e/v6e (128 MiB VMEM); the even-tile split
    below keeps both v7x TensorCores busy. vmem_limit stays in the 32-48 MiB
    band that is safe on v7x's 64 MiB/TC; raise it on v6e/v5e if block_b grows.
    """
    B, H = x.shape
    Hw, C = w.shape
    assert Hw == H

    C_pad = _round_up(C, _LANE)                   # lane-dense logits

    # Batch tile: multiple of 16 (bf16 sublane packing). If everything would
    # fit in a single tile, split into two so v7x's two TensorCores each get
    # work via the parallel grid axis.
    bb = _round_up(min(block_b, B), 16)
    if _cdiv(B, bb) == 1 and bb >= 32:
        bb = _round_up(_cdiv(B, 2), 16)
    num_tiles = _cdiv(B, bb)
    B_pad = num_tiles * bb

    # x / labels go straight through when no row padding is needed (avoids a
    # full extra HBM pass over x); padding is a fallback only.
    x_in = x
    lbl_in = labels.astype(jnp.int32).reshape(B, 1)
    if B_pad != B:
        x_in = jnp.zeros((B_pad, H), x.dtype).at[:B].set(x)
        lbl_in = jnp.zeros((B_pad, 1), jnp.int32).at[:B].set(lbl_in)

    # Weight padded to lane-dense bf16; bias padded with -1e30 so padded class
    # columns are killed inside the softmax without any in-kernel mask.
    w_p = jnp.zeros((H, C_pad), jnp.bfloat16).at[:, :C].set(
        w.astype(jnp.bfloat16))
    b_p = jnp.full((1, C_pad), _NEG_BIG, jnp.float32).at[:, :C].set(
        b.astype(jnp.float32))

    kernel = functools.partial(_step_kernel, batch_size=B, block_b=bb,
                               mask_rows=(B_pad != B))

    logits_pad, per_ex_loss = pl.pallas_call(
        kernel,
        out_shape=(
            jax.ShapeDtypeStruct((B_pad, C_pad), jnp.float32),
            jax.ShapeDtypeStruct((B_pad, 1), jnp.float32),
        ),
        grid_spec=pltpu.PrefetchScalarGridSpec(
            num_scalar_prefetch=0,
            grid=(num_tiles,),
            in_specs=[
                pl.BlockSpec((bb, H), lambda i: (i, 0)),          # x tile
                _single_buffered((H, C_pad), lambda i: (0, 0)),   # weight
                _single_buffered((1, C_pad), lambda i: (0, 0)),   # bias
                pl.BlockSpec((bb, 1), lambda i: (i, 0)),          # labels
            ],
            out_specs=[
                pl.BlockSpec((bb, C_pad), lambda i: (i, 0)),      # logits
                pl.BlockSpec((bb, 1), lambda i: (i, 0)),          # per-ex loss
            ],
        ),
        compiler_params=pltpu.CompilerParams(
            dimension_semantics=("parallel",),   # shard tiles on v7x's 2 TCs
            vmem_limit_bytes=vmem_limit_bytes,
        ),
    )(x_in, w_p, b_p, lbl_in)

    logits = logits_pad[:B, :C]
    mean_loss = jnp.sum(per_ex_loss) / B          # padded rows contribute 0
    return logits, mean_loss


if __name__ == "__main__":
    # Small deterministic setup consistent with Trainer's logits/labels
    # interface: batch=256 examples, hidden=32 features, args.num_classes=4.
    B, H, C = 256, 32, 4
    key = jax.random.PRNGKey(0)
    kx, kw, kb, kl = jax.random.split(key, 4)

    x = jax.random.normal(kx, (B, H), dtype=jnp.float32)
    w = jax.random.normal(kw, (H, C), dtype=jnp.float32) * 0.1
    b = jax.random.normal(kb, (1, C), dtype=jnp.float32) * 0.01
    labels = jax.random.randint(kl, (B,), 0, C)

    # block_b=128 -> grid of 2 batch tiles (both v7x TensorCores get work),
    # and B % block_b == 0 so x/labels pass through with no padding copy.
    logits, loss = model_step(x, w, b, labels, block_b=128)
    logits = jax.block_until_ready(logits)
    loss = jax.block_until_ready(loss)

    # Host-side metric update (Trainer.metrics.update analogue).
    preds = jnp.argmax(logits, axis=-1)
    acc = jnp.mean((preds == labels).astype(jnp.float32))

    # Reference check (pure JAX, same bf16-MXU / f32-softmax numerics).
    ref_logits = jnp.dot(x.astype(jnp.bfloat16), w.astype(jnp.bfloat16),
                         preferred_element_type=jnp.float32) + b
    ref_logp = jax.nn.log_softmax(ref_logits, axis=-1)
    ref_loss = -jnp.mean(ref_logp[jnp.arange(B), labels])
    assert jnp.allclose(logits, ref_logits, atol=1e-3, rtol=1e-3)
    assert jnp.allclose(loss, ref_loss, atol=1e-3, rtol=1e-3)
    _ = float(acc)  # metrics computed but not asserted (synthetic model)

    print("KERNEL_OK")
</pallas_src>

<mosaic_0001>
module attributes {stable_mosaic.version = 11 : i64} {
  func.func @_step_kernel(%arg0: i32, %arg1: memref<128x32xf32, #tpu.memory_space<vmem>>, %arg2: memref<32x128xbf16, #tpu.memory_space<vmem>>, %arg3: memref<1x128xf32, #tpu.memory_space<vmem>>, %arg4: memref<128x1xi32, #tpu.memory_space<vmem>>, %arg5: memref<128x128xf32, #tpu.memory_space<vmem>>, %arg6: memref<128x1xf32, #tpu.memory_space<vmem>>) attributes {dimension_semantics = [#tpu.dimension_semantics<parallel>], iteration_bounds = array<i64: 2>, scalar_prefetch = 0 : i64, scratch_operands = 0 : i64, tpu.core_type = #tpu.core_type<tc>, window_params = [{transform_indices = @transform_0, window_bounds = array<i64: 128, 32>}, {pipeline_mode = #tpu.pipeline_mode<synchronous>, transform_indices = @transform_1, window_bounds = array<i64: 32, 128>}, {pipeline_mode = #tpu.pipeline_mode<synchronous>, transform_indices = @transform_2, window_bounds = array<i64: 1, 128>}, {transform_indices = @transform_3, window_bounds = array<i64: 128, 1>}, {transform_indices = @transform_4, window_bounds = array<i64: 128, 128>}, {transform_indices = @transform_5, window_bounds = array<i64: 128, 1>}]} {
    %c0 = arith.constant 0 : index
    %c0_0 = arith.constant 0 : index
    %0 = vector.load %arg1[%c0, %c0_0] : memref<128x32xf32, #tpu.memory_space<vmem>>, vector<128x32xf32>
    %1 = arith.truncf %0 : vector<128x32xf32> to vector<128x32xbf16>
    %c0_1 = arith.constant 0 : index
    %c0_2 = arith.constant 0 : index
    %2 = vector.load %arg2[%c0_1, %c0_2] : memref<32x128xbf16, #tpu.memory_space<vmem>>, vector<32x128xbf16>
    %cst = arith.constant dense<0.000000e+00> : vector<128x128xf32>
    %3 = tpu.matmul %1, %2, %cst {dimension_numbers = #tpu.dot_dimension_numbers<[1], [0], [0], [1], [0, 0, 1, 1], [], []>} : vector<128x32xbf16>, vector<32x128xbf16>, vector<128x128xf32> -> vector<128x128xf32>
    %c0_3 = arith.constant 0 : index
    %c0_4 = arith.constant 0 : index
    %4 = vector.load %arg3[%c0_3, %c0_4] : memref<1x128xf32, #tpu.memory_space<vmem>>, vector<1x128xf32>
    %5 = vector.broadcast %4 : vector<1x128xf32> to vector<128x128xf32>
    %6 = arith.addf %3, %5 : vector<128x128xf32>
    %c0_5 = arith.constant 0 : index
    %c0_6 = arith.constant 0 : index
    %7 = vector.load %arg5[%c0_5, %c0_6] : memref<128x128xf32, #tpu.memory_space<vmem>>, vector<128x128xf32>
    tpu.vector_store %arg5[%c0_5, %c0_6], %6 {strides = array<i32>} : memref<128x128xf32, #tpu.memory_space<vmem>>, vector<128x128xf32>,
    %cst_7 = arith.constant dense<0xFF800000> : vector<128xf32>
    %8 = vector.multi_reduction <maximumf>, %6, %cst_7 [1] : vector<128x128xf32> to vector<128xf32>
    %9 = vector.shape_cast %8 : vector<128xf32> to vector<128x1xf32>
    %10 = vector.broadcast %9 : vector<128x1xf32> to vector<128x128xf32>
    %11 = arith.subf %6, %10 : vector<128x128xf32>
    %12 = math.exp %11 : vector<128x128xf32>
    %cst_8 = arith.constant dense<0.000000e+00> : vector<128xf32>
    %13 = vector.multi_reduction <add>, %12, %cst_8 [1] : vector<128x128xf32> to vector<128xf32>
    %14 = vector.shape_cast %13 : vector<128xf32> to vector<128x1xf32>
    %15 = math.log %14 : vector<128x1xf32>
    %16 = tpu.iota {dimensions = array<i32: 1>} : vector<128x128xi32>
    %c0_9 = arith.constant 0 : index
    %c0_10 = arith.constant 0 : index
    %17 = vector.load %arg4[%c0_9, %c0_10] : memref<128x1xi32, #tpu.memory_space<vmem>>, vector<128x1xi32>
    %18 = vector.broadcast %17 : vector<128x1xi32> to vector<128x128xi32>
    %19 = arith.cmpi eq, %16, %18 : vector<128x128xi32>
    %cst_11 = arith.constant 0.000000e+00 : f32
    %20 = vector.broadcast %cst_11 : f32 to vector<128x128xf32>
    %21 = arith.select %19, %11, %20 : vector<128x128xi1>, vector<128x128xf32>
    %cst_12 = arith.constant dense<0.000000e+00> : vector<128xf32>
    %22 = vector.multi_reduction <add>, %21, %cst_12 [1] : vector<128x128xf32> to vector<128xf32>
    %23 = vector.shape_cast %22 : vector<128xf32> to vector<128x1xf32>
    %24 = arith.subf %15, %23 : vector<128x1xf32>
    %c0_13 = arith.constant 0 : index
    %c0_14 = arith.constant 0 : index
    %25 = vector.load %arg6[%c0_13, %c0_14] : memref<128x1xf32, #tpu.memory_space<vmem>>, vector<128x1xf32>
    tpu.vector_store %arg6[%c0_13, %c0_14], %24 {strides = array<i32>} : memref<128x1xf32, #tpu.memory_space<vmem>>, vector<128x1xf32>,
    return
  }
  func.func @transform_0(%arg0: i32) -> (i32, i32) {
    %c0_i32 = arith.constant 0 : i32
    %c0_i32_0 = arith.constant 0 : i32
    return %arg0, %c0_i32 : i32, i32
  }
  func.func @transform_1(%arg0: i32) -> (i32, i32) {
    %c0_i32 = arith.constant 0 : i32
    %c0_i32_0 = arith.constant 0 : i32
    %c0_i32_1 = arith.constant 0 : i32
    return %c0_i32, %c0_i32_0 : i32, i32
  }
  func.func @transform_2(%arg0: i32) -> (i32, i32) {
    %c0_i32 = arith.constant 0 : i32
    %c0_i32_0 = arith.constant 0 : i32
    %c0_i32_1 = arith.constant 0 : i32
    return %c0_i32, %c0_i32_0 : i32, i32
  }
  func.func @transform_3(%arg0: i32) -> (i32, i32) {
    %c0_i32 = arith.constant 0 : i32
    %c0_i32_0 = arith.constant 0 : i32
    return %arg0, %c0_i32 : i32, i32
  }
  func.func @transform_4(%arg0: i32) -> (i32, i32) {
    %c0_i32 = arith.constant 0 : i32
    %c0_i32_0 = arith.constant 0 : i32
    return %arg0, %c0_i32 : i32, i32
  }
  func.func @transform_5(%arg0: i32) -> (i32, i32) {
    %c0_i32 = arith.constant 0 : i32
    %c0_i32_0 = arith.constant 0 : i32
    return %arg0, %c0_i32 : i32, i32
  }
}

</mosaic_0001>

<bundles_post_ra>
// kernel: tpu_custom_call.1
= control target key start
LH: loop header
LB: loop body
LE: loop exit
PB: predicated region body
PF: predicated region fallthrough
CT: control target
= control target key end

     0   :  { %11 = vsyncpa [#allocation3], 0  ;;  %s1529_s0 = inlined_call_operand.vmem [shape: f32[256,32], index: 0, kind: input, shape index: {}]   ;;  %s1530_s1 = inlined_call_operand.vmem [shape: bf16[32,128], index: 1, kind: input, shape index: {}]   ;;  %s1531_s2 = inlined_call_operand.vmem [shape: f32[1,128], index: 2, kind: input, shape index: {}]   ;;  %s1532_s3 = inlined_call_operand.vmem [shape: s32[256,1], index: 3, kind: input, shape index: {}]   ;;  %s1533_s4 = inlined_call_operand.hbm [shape: f32[256,128], index: 4, kind: output, shape index: {0}]   ;;  %s1534_s5 = inlined_call_operand.vmem [shape: f32[256,1], index: 5, kind: output, shape index: {1}]  }
   0x1   :  { %13 = vsyncpa [#allocation3 + $0x1], 0  ;;  %s1145_s18 = smov 0   ;;  %s1147_s19 = smov 0  }
   0x2   :  { %s1149_s20 = smov 0   ;;  %s1151_s21 = smov 0  }
   0x3 LB: > { %s1166_s22 = sadd.s32 4294967295, %s1109_s21   ;;  %s877_s23 = sadd.s32 4294967294, %s1109_s21   ;;  %s1109_s21 = sphi %s1151_s21, %s1540_s21   ;;  %s1105_s20 = sphi %s1149_s20, %s1539_s20   ;;  %s1101_s19 = sphi %s1147_s19, %s1538_s19   ;;  %s1097_s18 = sphi %s1145_s18, %s1537_s18  }
   0x4   : > { %s1170_s24 = sadd.s32 1, %s1109_s21   ;;  %s120_s25 = sadd.s32 1, %s1105_s20 }
   0x5   : > { %s117_s26 = ssub.s32 %s1109_s21, %s1170_s24  ;;  %p130_p0 = scmp.ne.s32.totalorder %s1105_s20, %s1101_s19 }
   0x6   : > { %p118_p1 = scmp.eq.s32.totalorder %s117_s26, 0  ;;  %p131_p2 = scmp.eq.s32.totalorder %s1166_s22, 1 }
   0x7   : > { %p136_p3 = scmp.ne.s32.totalorder %s1101_s19, %s1097_s18  ;;  %p137_p4 = scmp.eq.s32.totalorder %s877_s23, 1 }
   0x8   : > { %s1181_s27 = scalar_select %p118_p1, %s1105_s20, %s120_s25  }
   0x9   : > { %p1183_p5 = por %p131_p2, %p130_p0  ;;  %p1187_p6 = por %p137_p4, %p136_p3 }
   0xa   : > { %p880_p7 = scmp.ge.s32.totalorder %s1109_s21, 1  ;;  %p205_p8 = scmp.lt.s32.totalorder %s1109_s21, 3 }
   0xc   : > { %p206_p9 = pnand %p880_p7, %p205_p8 }
   0xd   : > { %s882_s7 = sshll.u32 (!%p206_p9), %s1166_s22, 4  ;;  %s233_s17 = sand.u32 (!%p206_p9), 1, %s1101_s19  }
   0xe   : > { %209 = sbr.rel (%p206_p9) target bundleno = 578 (0x242), region = 36  ;;  %p244_p10 = scmp.lt.s32.totalorder (!%p206_p9), %s882_s7, 31 }
   0xf   : > { %s881_s23 = sshll.u32 (!%p206_p9), %s233_s17, 7  ;;  %s904_s6 = sshll.u32 (!%p206_p9), %s1166_s22, 11 }
  0x10   : > { %s1262_s30 = scalar_lea.vmem (!%p206_p9), [#allocation2], %s881_s23  ;;  %s1433_s11 = scalar_lea.hbm (!%p206_p9), %s1533_s4, %s904_s6 }
  0x11   : > { %s1439_s12 = scalar_lea.sflag (!%p206_p9), [#allocation3], %s233_s17  ;;  %s1112_s22 = smov (!%p206_p9), [#allocation2]  }
  0x12   : > { %s1053_s14 = sshll.u32 (!%p206_p9), %s1112_s22, 4  ;;  %s1054_s14 = int_to_ptr.vmem [resolvable:$false] %s1053_s14 }
  0x13   : > { %v983_v0 = vld [vmem:[%s1530_s1 + $0x8] sm:$0xff]   ;;  %v984_v1 = vld [vmem:[%s1530_s1] sm:$0xff]   ;;  %s1542_s7 = smov (!%p244_p10, %s882_s7), 31  ;;  %v1111_v2 = vmov 0   ;;  %vm310_vm0 = vcmask 261120   ;;  %s1055_s15 = scalar_lea.vmem %s1054_s14, 4096 }
  0x14   : > { %915 = vmatprep.subr.bf16.mxu0 %v983_v0  ;;  %935 = vmatprep.subr.bf16.mxu1 %v983_v0  ;;  %s1200_s10 = sshll.u32 %s1542_s7, 3  ;;  %v888_v41 = vld [vmem:[%s1531_s2] ss:$0 sm:$0xff]  ;;  %s774_s7 = sshll.u32 %s1262_s30, 4  ;;  %s1435_s7 = int_to_ptr.vmem [resolvable:$true] %s774_s7 }
  0x15   : > { %916 = vmatpush3.bf16.msra.mxu0 %v983_v0  ;;  %937 = vmatpush3.bf16.msra.mxu1 %v983_v0  ;;  %s1206_s13 = scalar_lea.vmem %s1529_s0, %s1200_s10  ;;  %s1221_s16 = scalar_lea.vmem %s1532_s3, %s1200_s10 }
  0x16   : > { %917 = vmatprep.subr.bf16.mxu0 %v984_v1  ;;  %936 = vmatprep.subr.bf16.mxu1 %v984_v1  ;;  %v263_v3 = vld [vmem:[%s1206_s13] sm:$0xff]  ;;  %v264_v4 = vld [vmem:[%s1206_s13 + $0x8] sm:$0xff]  ;;  %v265_v8 = vld [vmem:[%s1206_s13 + $0x10] sm:$0xff]  ;;  %p1056_p0 = scmp.lt.s32.totalorder %s1435_s7, %s1054_s14 }
  0x17   : > { %982 = vset.pattern.permute.xlu1 %v1111_v2  ;;  %981 = vset.pattern.permute.xlu0 %v1111_v2  ;;  %v271_v5 = vld [vmem:[%s1206_s13 + $0x40] sm:$0xff]  ;;  %v279_v6 = vpack.c.bf16 %v264_v4, %v263_v3  ;;  %v272_v7 = vld [vmem:[%s1206_s13 + $0x48] sm:$0xff]  ;;  %v266_v9 = vld [vmem:[%s1206_s13 + $0x18] sm:$0xff] }
  0x18   : > { %v283_v10 = vpack.c.bf16 %v272_v7, %v271_v5  ;;  %v280_v11 = vpack.c.bf16 %v266_v9, %v265_v8  ;;  %v273_v12 = vld [vmem:[%s1206_s13 + $0x50] sm:$0xff]  ;;  %v274_v13 = vld [vmem:[%s1206_s13 + $0x58] sm:$0xff]  ;;  %v267_v14 = vld [vmem:[%s1206_s13 + $0x20] sm:$0xff] }
  0x19   : > { %918 = vmatpush3.bf16.msra.mxu0 %v984_v1  ;;  %938 = vmatpush3.bf16.msra.mxu1 %v984_v1  ;;  %v284_v15 = vpack.c.bf16 %v274_v13, %v273_v12  ;;  %v268_v16 = vld [vmem:[%s1206_s13 + $0x28] sm:$0xff]  ;;  %v275_v18 = vld [vmem:[%s1206_s13 + $0x60] sm:$0xff]  ;;  %v269_v20 = vld [vmem:[%s1206_s13 + $0x30] sm:$0xff] }
  0x1a   : > { %919 = vmatprep.mubr.msk.bf16.mxu0 %vm310_vm0, %v279_v6  ;;  %927 = vmatprep.mubr.msk.bf16.mxu1 %vm310_vm0, %v283_v10  ;;  %v281_v17 = vpack.c.bf16 %v268_v16, %v267_v14  ;;  %v276_v19 = vld [vmem:[%s1206_s13 + $0x68] sm:$0xff]  ;;  %v270_v21 = vld [vmem:[%s1206_s13 + $0x38] sm:$0xff]  ;;  %v277_v24 = vld [vmem:[%s1206_s13 + $0x70] sm:$0xff] }
  0x1b   : > { %v285_v22 = vpack.c.bf16 %v276_v19, %v275_v18  ;;  %v595_v23 = vld [vmem:[%s1221_s16 + $0x8] sm:$0xff]  ;;  %v278_v25 = vld [vmem:[%s1206_s13 + $0x78] sm:$0xff]  ;;  %v596_v26 = vld [vmem:[%s1221_s16 + $0x10] sm:$0xff]  ;;  %v282_v27 = vpack.c.bf16 %v270_v21, %v269_v20  ;;  %s1049_s13 = scalar_lea.vmem %s1435_s7, 2048 }
  0x1c   : > { %920 = vmatmul.mubr.msk.bf16.vlgmr.msra.gmra.mxu0 %vm310_vm0, %v280_v11  ;;  %928 = vmatmul.mubr.msk.bf16.vlgmr.msra.gmra.mxu1 %vm310_vm0, %v284_v15  ;;  %v594_v28 = vld [vmem:[%s1221_s16] sm:$0xff]  ;;  %v286_v29 = vpack.c.bf16 %v278_v25, %v277_v24  ;;  %v603_v30 = vld [vmem:[%s1221_s16 + $0x48] sm:$0xff]  ;;  %v597_v31 = vld [vmem:[%s1221_s16 + $0x18] sm:$0xff]  ;;  %v592_v24 = vlaneseq  ;;  %p1050_p11 = scmp.ne.s32.totalorder %s1435_s7, %s1049_s13  ;;  %p1057_p1 = scmp.lt.s32.totalorder %s1055_s15, %s1049_s13 }
  0x1d   : > { %923 = vmatprep.mubr.msk.bf16.mxu0 %vm310_vm0, %v281_v17  ;;  %614 = vperm.xlu1 %982, %v595_v23   ;;  %v605_v32 = vld [vmem:[%s1221_s16 + $0x58] sm:$0xff]  ;;  %v598_v33 = vld [vmem:[%s1221_s16 + $0x20] sm:$0xff]  ;;  %v607_v34 = vld [vmem:[%s1221_s16 + $0x68] sm:$0xff] }
  0x1e   : > { %931 = vmatprep.mubr.msk.bf16.mxu1 %vm310_vm0, %v285_v22  ;;  %611 = vperm.xlu0 %981, %v594_v28   ;;  %v599_v35 = vld [vmem:[%s1221_s16 + $0x28] sm:$0xff]  ;;  %v600_v36 = vld [vmem:[%s1221_s16 + $0x30] sm:$0xff]  ;;  %v601_v37 = vld [vmem:[%s1221_s16 + $0x38] sm:$0xff]  ;;  %p1051_p12 = pnand %p1050_p11, %p1183_p5  ;;  %p1058_p2 = por %p1057_p1, %p1056_p0 }
  0x1f   : > { %v602_v38 = vld [vmem:[%s1221_s16 + $0x40] sm:$0xff]  ;;  %v604_v39 = vld [vmem:[%s1221_s16 + $0x50] sm:$0xff]  ;;  %v609_v11 = vld [vmem:[%s1221_s16 + $0x78] sm:$0xff] }
  0x20   : > { %v606_v40 = vld [vmem:[%s1221_s16 + $0x60] sm:$0xff]  ;;  %v608_v10 = vld [vmem:[%s1221_s16 + $0x70] sm:$0xff]  ;;  %p1052_p13 = pneg %p1051_p12 }
  0x21   : > { %617 = vperm.xlu1 %982, %v596_v26  }
  0x22   : > { %638 = vperm.xlu0 %981, %v603_v30   ;;  %p1059_p3 = pnand %p1058_p2, %p1052_p13 }
  0x24   : > { %924 = vmatmul.mubr.msk.bf16.gmra.mxu0 %vm310_vm0, %v282_v27  ;;  %932 = vmatmul.mubr.msk.bf16.gmra.mxu1 %vm310_vm0, %v286_v29  ;;  %v1358_v27 = vand.u32 127, %v592_v24 }
  0x25   : > { %620 = vperm.xlu1 %982, %v597_v31  }
  0x26   : > { %644 = vperm.xlu0 %981, %v605_v32  }
  0x29   : > { %623 = vperm.xlu1 %982, %v598_v33  }
  0x2a   : > { %650 = vperm.xlu0 %981, %v607_v34  }
  0x2d   : > { %626 = vperm.xlu1 %982, %v599_v35  }
  0x31   : > { %629 = vperm.xlu1 %982, %v600_v36  }
  0x35   : > { %632 = vperm.xlu1 %982, %v601_v37  }
  0x39   : > { %635 = vperm.xlu1 %982, %v602_v38  }
  0x3d   : > { %641 = vperm.xlu1 %982, %v604_v39  }
  0x41   : > { %647 = vperm.xlu1 %982, %v606_v40  }
  0x98   : > { %v615_v12 = vpop.permute.xlu1 %614 }
  0x99   : > { %v612_v19 = vpop.permute.xlu0 %611  ;;  %vm659_vm4 = vcmp.eq.s32.totalorder %v1358_v27, %v615_v12 }
  0x9a   : > { %vm658_vm3 = vcmp.eq.s32.totalorder %v1358_v27, %v612_v19 }
  0x9c   : > { %v618_v13 = vpop.permute.xlu1 %617 }
  0x9d   : > { %v1348_v21 = vpop.permute.xlu0 %638  ;;  %vm660_vm1 = vcmp.eq.s32.totalorder %v1358_v27, %v618_v13 }
  0x9e   : > { %vm667_vm9 = vcmp.eq.s32.totalorder %v1358_v27, %v1348_v21 }
  0xa0   : > { %v621_v14 = vpop.permute.xlu1 %620 }
  0xa1   : > { %v1352_v23 = vpop.permute.xlu0 %644  ;;  %vm661_vm2 = vcmp.eq.s32.totalorder %v1358_v27, %v621_v14 }
  0xa2   : > { %vm669_vm11 = vcmp.eq.s32.totalorder %v1358_v27, %v1352_v23 }
  0xa4   : > { %v1342_v15 = vpop.permute.xlu1 %623 }
  0xa5   : > { %v1356_v26 = vpop.permute.xlu0 %650  ;;  %vm662_vm8 = vcmp.eq.s32.totalorder %v1358_v27, %v1342_v15 }
  0xa6   : > { %vm671_vm13 = vcmp.eq.s32.totalorder %v1358_v27, %v1356_v26 }
  0xa8   : > { %v1344_v16 = vpop.permute.xlu1 %626 }
  0xa9   : > { %vm663_vm7 = vcmp.eq.s32.totalorder %v1358_v27, %v1344_v16 }
  0xac   : > { %v630_v17 = vpop.permute.xlu1 %629 }
  0xad   : > { %vm664_vm6 = vcmp.eq.s32.totalorder %v1358_v27, %v630_v17 }
  0xb0   : > { %v633_v18 = vpop.permute.xlu1 %632 }
  0xb1   : > { %vm665_vm5 = vcmp.eq.s32.totalorder %v1358_v27, %v633_v18 }
  0xb4   : > { %v1346_v20 = vpop.permute.xlu1 %635 }
  0xb5   : > { %vm666_vm10 = vcmp.eq.s32.totalorder %v1358_v27, %v1346_v20 }
  0xb8   : > { %v1350_v22 = vpop.permute.xlu1 %641 }
  0xb9   : > { %vm668_vm12 = vcmp.eq.s32.totalorder %v1358_v27, %v1350_v22 }
  0xbc   : > { %v1354_v25 = vpop.permute.xlu1 %647 }
  0xbd   : > { %vm670_vm14 = vcmp.eq.s32.totalorder %v1358_v27, %v1354_v25 }
  0xdc   : > { %v921_v42 = vpop.f32.mrf.mxu0  ;;  %v929_v44 = vpop.f32.mrf.mxu1 }
  0xdd   : > { %v1258_v43 = vadd.f32 %v921_v42, %v888_v41  ;;  %v1260_v45 = vadd.f32 %v929_v44, %v888_v41 }
  0xde   : > { %v369_v46 = vpop.f32.mrf.mxu0  ;;  %v401_v48 = vpop.f32.mrf.mxu1 }
  0xdf   : > { %434 = vst [vmem:[%s1262_s30 + $0x10] sm:$0xff] %v1258_v43  ;;  %v1266_v47 = vadd.f32 %v888_v41, %v369_v46  ;;  %452 = vmax.xlane.f32.xlu1 %v1258_v43  ;;  %442 = vst [vmem:[%s1262_s30 + $0x50] sm:$0xff] %v1260_v45  ;;  %v1271_v49 = vadd.f32 %v888_v41, %v401_v48  ;;  %468 = vmax.xlane.f32.xlu0 %v1260_v45 }
  0xe0   : > { %v922_v50 = vpop.f32.mrf.mxu0  ;;  %v930_v52 = vpop.f32.mrf.mxu1 }
  0xe1   : > { %432 = vst [vmem:[%s1262_s30] sm:$0xff] %v1266_v47  ;;  %v1276_v51 = vadd.f32 %v922_v50, %v888_v41  ;;  %440 = vst [vmem:[%s1262_s30 + $0x40] sm:$0xff] %v1271_v49  ;;  %v1280_v53 = vadd.f32 %v930_v52, %v888_v41 }
  0xe2   : > { %v372_v54 = vpop.f32.mrf.mxu0  ;;  %v404_v56 = vpop.f32.mrf.mxu1 }
  0xe3   : > { %435 = vst [vmem:[%s1262_s30 + $0x18] sm:$0xff] %v1276_v51  ;;  %v1284_v55 = vadd.f32 %v888_v41, %v372_v54  ;;  %454 = vmax.xlane.f32.xlu1 %v1276_v51  ;;  %443 = vst [vmem:[%s1262_s30 + $0x58] sm:$0xff] %v1280_v53  ;;  %v1289_v57 = vadd.f32 %v888_v41, %v404_v56  ;;  %448 = vmax.xlane.f32.xlu0 %v1266_v47 }
  0xe4   : > { %v925_v58 = vpop.f32.mrf.mxu0  ;;  %v933_v60 = vpop.f32.mrf.mxu1 }
  0xe5   : > { %433 = vst [vmem:[%s1262_s30 + $0x8] sm:$0xff] %v1284_v55  ;;  %v1294_v59 = vadd.f32 %v925_v58, %v888_v41  ;;  %441 = vst [vmem:[%s1262_s30 + $0x48] sm:$0xff] %v1289_v57  ;;  %v1298_v62 = vadd.f32 %v933_v60, %v888_v41 }
  0xe6   : > { %v385_v61 = vpop.f32.mrf.mxu0  ;;  %v417_v0 = vpop.f32.mrf.mxu1 }
  0xe7   : > { %438 = vst [vmem:[%s1262_s30 + $0x30] sm:$0xff] %v1294_v59  ;;  %v1302_v63 = vadd.f32 %v888_v41, %v385_v61  ;;  %470 = vmax.xlane.f32.xlu1 %v1280_v53  ;;  %446 = vst [vmem:[%s1262_s30 + $0x70] sm:$0xff] %v1298_v62  ;;  %464 = vmax.xlane.f32.xlu0 %v1271_v49  ;;  %v1308_v2 = vadd.f32 %v888_v41, %v417_v0 }
  0xe8   : > { %v926_v1 = vpop.f32.mrf.mxu0  ;;  %v934_v4 = vpop.f32.mrf.mxu1 }
  0xe9   : > { %436 = vst [vmem:[%s1262_s30 + $0x20] sm:$0xff] %v1302_v63  ;;  %v1312_v3 = vadd.f32 %v926_v1, %v888_v41  ;;  %444 = vst [vmem:[%s1262_s30 + $0x60] sm:$0xff] %v1308_v2  ;;  %v1316_v6 = vadd.f32 %v934_v4, %v888_v41 }
  0xea   : > { %v388_v5 = vpop.f32.mrf.mxu0  ;;  %v420_v8 = vpop.f32.mrf.mxu1 }
  0xeb   : > { %439 = vst [vmem:[%s1262_s30 + $0x38] sm:$0xff] %v1312_v3  ;;  %v1320_v7 = vadd.f32 %v888_v41, %v388_v5  ;;  %466 = vmax.xlane.f32.xlu1 %v1289_v57  ;;  %447 = vst [vmem:[%s1262_s30 + $0x78] sm:$0xff] %v1316_v6  ;;  %450 = vmax.xlane.f32.xlu0 %v1284_v55  ;;  %v1326_v9 = vadd.f32 %v888_v41, %v420_v8 }
  0xed   : > { %437 = vst [vmem:[%s1262_s30 + $0x28] sm:$0xff] %v1320_v7  ;;  %445 = vst [vmem:[%s1262_s30 + $0x68] sm:$0xff] %v1326_v9 }
  0xef   : > { %462 = vmax.xlane.f32.xlu1 %v1312_v3  ;;  %460 = vmax.xlane.f32.xlu0 %v1294_v59 }
  0xf3   : > { %478 = vmax.xlane.f32.xlu1 %v1316_v6  ;;  %476 = vmax.xlane.f32.xlu0 %v1298_v62 }
  0xf7   : > { %458 = vmax.xlane.f32.xlu1 %v1320_v7  ;;  %456 = vmax.xlane.f32.xlu0 %v1302_v63 }
  0xfb   : > { %474 = vmax.xlane.f32.xlu1 %v1326_v9  ;;  %472 = vmax.xlane.f32.xlu0 %v1308_v2 }
 0x10c   : > { %653 = vperm.xlu1 %982, %v608_v10  }
 0x111   : > { %656 = vperm.xlu0 %981, %v609_v11  }
 0x168   : > { %v453_v28 = vpop.xlane.xlu1 %452  ;;  %v469_v29 = vpop.xlane.xlu0 %468 }
 0x169   : > { %v482_v30 = vsub.f32 %v1258_v43, %v453_v28  ;;  %v1372_v46 = vsub.f32 %v1260_v45, %v469_v29 }
 0x16b   : > { %v676_v31 = vsel %vm660_vm1, %v482_v30, 0.0 }
 0x16c   : > { %v455_v32 = vpop.xlane.xlu1 %454  ;;  %694 = vadd.xlane.f32.xlu0 %v676_v31  ;;  %v449_v34 = vpop.xlane.xlu0 %448 }
 0x16d   : > { %v483_v33 = vsub.f32 %v1276_v51, %v455_v32  ;;  %v480_v35 = vsub.f32 %v1266_v47, %v449_v34  ;;  %v500_v47 = vmul.f32 1.442695, %v482_v30 }
 0x16f   : > { %v677_v36 = vsel %vm661_vm2, %v483_v33, 0.0  ;;  %v674_v38 = vsel %vm658_vm3, %v480_v35, 0.0  ;;  %v502_v42 = vmul.f32 1.442695, %v483_v33  ;;  %v496_v1 = vmul.f32 1.442695, %v480_v35 }
 0x170   : > { %v471_v37 = vpop.xlane.xlu1 %470  ;;  %696 = vadd.xlane.f32.xlu1 %v677_v36  ;;  %690 = vadd.xlane.f32.xlu0 %v674_v38  ;;  %v465_v39 = vpop.xlane.xlu0 %464 }
 0x171   : > { %v1367_v43 = vsub.f32 %v1280_v53, %v471_v37  ;;  %985 = vpow2.f32 %v502_v42 }
 0x172   : > { %987 = vpow2.f32 %v500_v47 }
 0x173   : > { %v518_v53 = vmul.f32 1.442695, %v1367_v43 }
 0x174   : > { %v467_v40 = vpop.xlane.xlu1 %466  ;;  %v451_v41 = vpop.xlane.xlu0 %450 }
 0x175   : > { %v481_v44 = vsub.f32 %v1284_v55, %v451_v41  ;;  %v516_v55 = vmul.f32 1.442695, %v1372_v46  ;;  %989 = vpow2.f32 %v518_v53  ;;  %v1381_v61 = vsub.f32 %v1289_v57, %v467_v40 }
 0x177   : > { %v675_v50 = vsel %vm659_vm4, %v481_v44, 0.0  ;;  %v498_v0 = vmul.f32 1.442695, %v481_v44  ;;  %991 = vpow2.f32 %v516_v55  ;;  %v514_v8 = vmul.f32 1.442695, %v1381_v61 }
 0x178   : > { %v463_v48 = vpop.xlane.xlu1 %462  ;;  %692 = vadd.xlane.f32.xlu1 %v675_v50  ;;  %v461_v52 = vpop.xlane.xlu0 %460  ;;  %v683_v44 = vsel %vm667_vm9, %v1381_v61, 0.0  ;;  %v684_v50 = vsel %vm668_vm12, %v1372_v46, 0.0 }
 0x179   : > { %v487_v51 = vsub.f32 %v1312_v3, %v463_v48  ;;  %v486_v54 = vsub.f32 %v1294_v59, %v461_v52  ;;  %v1384_v59 = vsub.f32 %v1271_v49, %v465_v39  ;;  %993 = vpow2.f32 %v498_v0 }
 0x17a   : > { %995 = vpow2.f32 %v496_v1  ;;  %v685_v48 = vsel %vm669_vm11, %v1367_v43, 0.0 }
 0x17b   : > { %v681_v45 = vsel %vm665_vm5, %v487_v51, 0.0  ;;  %v680_v58 = vsel %vm664_vm6, %v486_v54, 0.0  ;;  %v512_v57 = vmul.f32 1.442695, %v1384_v59  ;;  %997 = vpow2.f32 %v514_v8 }
 0x17c   : > { %v479_v56 = vpop.xlane.xlu1 %478  ;;  %704 = vadd.xlane.f32.xlu1 %v681_v45  ;;  %702 = vadd.xlane.f32.xlu0 %v680_v58  ;;  %v477_v60 = vpop.xlane.xlu0 %476  ;;  %v508_v14 = vmul.f32 1.442695, %v486_v54  ;;  %v510_v17 = vmul.f32 1.442695, %v487_v51  ;;  %v682_v47 = vsel %vm666_vm10, %v1384_v59, 0.0 }
 0x17d   : > { %999 = vpow2.f32 %v512_v57  ;;  %v1402_v18 = vsub.f32 %v1316_v6, %v479_v56 }
 0x17e   : > { %v986_v13 = vpop.eup %985 }
 0x17f   : > { %v988_v16 = vpop.eup %987 }
 0x180   : > { %v459_v3 = vpop.xlane.xlu1 %458  ;;  %v457_v5 = vpop.xlane.xlu0 %456 }
 0x181   : > { %v485_v4 = vsub.f32 %v1320_v7, %v459_v3  ;;  %v484_v10 = vsub.f32 %v1302_v63, %v457_v5  ;;  %v1398_v63 = vsub.f32 %v1298_v62, %v477_v60  ;;  %v526_v62 = vmul.f32 1.442695, %v1402_v18 }
 0x182   : > { %v990_v19 = vpop.eup %989 }
 0x183   : > { %v679_v49 = vsel %vm663_vm7, %v485_v4, 0.0  ;;  %v678_v11 = vsel %vm662_vm8, %v484_v10, 0.0  ;;  %v504_v30 = vmul.f32 1.442695, %v484_v10  ;;  %v506_v6 = vmul.f32 1.442695, %v485_v4 }
 0x184   : > { %700 = vadd.xlane.f32.xlu1 %v679_v49  ;;  %698 = vadd.xlane.f32.xlu0 %v678_v11  ;;  %v473_v7 = vpop.xlane.xlu0 %472  ;;  %v992_v24 = vpop.eup %991 }
 0x185   : > { %v1395_v12 = vsub.f32 %v1308_v2, %v473_v7  ;;  %v524_v2 = vmul.f32 1.442695, %v1398_v63  ;;  %v475_v28 = vpop.xlane.xlu1 %474 }
 0x186   : > { %v994_v29 = vpop.eup %993  ;;  %v493_v31 = vsub.f32 %v1326_v9, %v475_v28 }
 0x187   : > { %v520_v15 = vmul.f32 1.442695, %v1395_v12  ;;  %v996_v32 = vpop.eup %995  ;;  %v686_v22 = vsel %vm670_vm14, %v1395_v12, 0.0 }
 0x188   : > { %534 = vadd.xlane.f32.xlu1 %v986_v13  ;;  %532 = vadd.xlane.f32.xlu0 %v988_v16  ;;  %v998_v33 = vpop.eup %997  ;;  %v522_v34 = vmul.f32 1.442695, %v493_v31  ;;  %v687_v23 = vsel %vm671_vm13, %v493_v31, 0.0 }
 0x189   : > { %1001 = vpow2.f32 %v520_v15  ;;  %v654_v20 = vpop.permute.xlu1 %653 }
 0x18a   : > { %1003 = vpow2.f32 %v508_v14  ;;  %v1000_v35 = vpop.eup %999  ;;  %vm672_vm0 = vcmp.eq.s32.totalorder %v1358_v27, %v654_v20 }
 0x18b   : > { %1005 = vpow2.f32 %v510_v17  ;;  %v688_v46 = vsel %vm672_vm0, %v1398_v63, 0.0 }
 0x18c   : > { %550 = vadd.xlane.f32.xlu1 %v990_v19  ;;  %548 = vadd.xlane.f32.xlu0 %v992_v24  ;;  %1007 = vpow2.f32 %v524_v2  ;;  %v657_v21 = vpop.permute.xlu0 %656 }
 0x18d   : > { %1009 = vpow2.f32 %v526_v62  ;;  %vm673_vm15 = vcmp.eq.s32.totalorder %v1358_v27, %v657_v21 }
 0x18e   : > { %1011 = vpow2.f32 %v504_v30  ;;  %v689_v43 = vsel %vm673_vm15, %v1402_v18, 0.0 }
 0x18f   : > { %1013 = vpow2.f32 %v506_v6 }
 0x190   : > { %530 = vadd.xlane.f32.xlu1 %v994_v29  ;;  %528 = vadd.xlane.f32.xlu0 %v996_v32  ;;  %1015 = vpow2.f32 %v522_v34 }
 0x194   : > { %546 = vadd.xlane.f32.xlu1 %v998_v33  ;;  %544 = vadd.xlane.f32.xlu0 %v1000_v35 }
 0x196   : > { %v1002_v36 = vpop.eup %1001 }
 0x197   : > { %v1004_v37 = vpop.eup %1003 }
 0x198   : > { %552 = vadd.xlane.f32.xlu1 %v1002_v36  ;;  %540 = vadd.xlane.f32.xlu0 %v1004_v37  ;;  %v1006_v38 = vpop.eup %1005 }
 0x199   : > { %v1008_v39 = vpop.eup %1007 }
 0x19a   : > { %v1010_v9 = vpop.eup %1009 }
 0x19b   : > { %v1012_v40 = vpop.eup %1011 }
 0x19c   : > { %542 = vadd.xlane.f32.xlu1 %v1006_v38  ;;  %556 = vadd.xlane.f32.xlu0 %v1008_v39  ;;  %v1014_v41 = vpop.eup %1013 }
 0x19d   : > { %v1016_v42 = vpop.eup %1015 }
 0x1a0   : > { %558 = vadd.xlane.f32.xlu1 %v1010_v9  ;;  %536 = vadd.xlane.f32.xlu0 %v1012_v40 }
 0x1a4   : > { %538 = vadd.xlane.f32.xlu1 %v1014_v41  ;;  %554 = vadd.xlane.f32.xlu0 %v1016_v42 }
 0x1a8   : > { %708 = vadd.xlane.f32.xlu1 %v683_v44  ;;  %706 = vadd.xlane.f32.xlu0 %v682_v47 }
 0x1ac   : > { %712 = vadd.xlane.f32.xlu1 %v685_v48  ;;  %710 = vadd.xlane.f32.xlu0 %v684_v50 }
 0x1b0   : > { %716 = vadd.xlane.f32.xlu1 %v687_v23  ;;  %714 = vadd.xlane.f32.xlu0 %v686_v22 }
 0x1b4   : > { %720 = vadd.xlane.f32.xlu1 %v689_v43  ;;  %718 = vadd.xlane.f32.xlu0 %v688_v46 }
 0x1b5   : > { %1062 = shalt.err (!%p1059_p3)
}
 0x1b6   : > { %s1063_s16 = scalar_lea.hbm %s1433_s11, 2048  ;;  %s1067_s25 = scalar_lea.hbm %s1533_s4, 4096 }
 0x1b7   : > { %p1064_p4 = scmp.ne.s32.totalorder %s1433_s11, %s1063_s16  ;;  %p1068_p9 = scmp.lt.s32.totalorder %s1433_s11, %s1533_s4 }
 0x1b8   : > { %p1069_p10 = scmp.lt.s32.totalorder %s1067_s25, %s1063_s16 }
 0x1b9   : > { %p1065_p7 = pnand %p1064_p4, %p1183_p5 }
 0x1ba   : > { %p1070_p11 = por %p1069_p10, %p1068_p9 }
 0x1bb   : > { %p1066_p8 = pneg %p1065_p7 }
 0x1bd   : > { %p1071_p12 = pnand %p1070_p11, %p1066_p8 }
 0x1bf   : > { %1074 = shalt.err (!%p1071_p12)
}
 0x1c0   : > { %s1113_s6 = smov 128   ;;  %s1114_s8 = smov 8   ;;  %vm738_vm1 = vcmask 7168  }
 0x1c1   : > { %939 = dma.vmem_to_hbm [thread:$0]  (%p1183_p5), %s1435_s7, 2048, %s1433_s11, %s1439_s12, %s1113_s6, %s1113_s6, %s1114_s8  }
 0x1c2   : > { %s1474_s9 = scalar_lea.vmem %s1534_s5, %s1200_s10 }
 0x1f5   : > { %v695_v26 = vpop.xlane.xlu0 %694 }
 0x1f9   : > { %v697_v25 = vpop.xlane.xlu1 %696  ;;  %v691_v51 = vpop.xlane.xlu0 %690 }
 0x201   : > { %v693_v27 = vpop.xlane.xlu1 %692 }
 0x205   : > { %v1462_v52 = vpop.xlane.xlu1 %704  ;;  %v1464_v53 = vpop.xlane.xlu0 %702 }
 0x20d   : > { %v1466_v54 = vpop.xlane.xlu1 %700  ;;  %v1468_v55 = vpop.xlane.xlu0 %698 }
 0x211   : > { %v535_v45 = vpop.xlane.xlu1 %534  ;;  %v533_v56 = vpop.xlane.xlu0 %532 }
 0x212   : > { %1017 = vlog2.f32 %v535_v45 }
 0x213   : > { %1019 = vlog2.f32 %v533_v56 }
 0x215   : > { %v551_v58 = vpop.xlane.xlu1 %550  ;;  %v549_v60 = vpop.xlane.xlu0 %548 }
 0x219   : > { %v531_v61 = vpop.xlane.xlu1 %530  ;;  %v529_v0 = vpop.xlane.xlu0 %528 }
 0x21a   : > { %1021 = vlog2.f32 %v531_v61 }
 0x21b   : > { %1023 = vlog2.f32 %v529_v0 }
 0x21d   : > { %v547_v1 = vpop.xlane.xlu1 %546  ;;  %v545_v59 = vpop.xlane.xlu0 %544 }
 0x21e   : > { %1025 = vlog2.f32 %v547_v1 }
 0x21f   : > { %v1018_v3 = vpop.eup %1017  ;;  %1027 = vlog2.f32 %v545_v59 }
 0x220   : > { %v1020_v4 = vpop.eup %1019  ;;  %v567_v5 = vmul.f32 0.6931472, %v1018_v3 }
 0x221   : > { %v565_v8 = vmul.f32 0.6931472, %v1020_v4  ;;  %v553_v10 = vpop.xlane.xlu1 %552  ;;  %v541_v49 = vpop.xlane.xlu0 %540 }
 0x222   : > { %v725_v57 = vsub.f32 %v567_v5, %v697_v25  ;;  %1029 = vlog2.f32 %v541_v49 }
 0x223   : > { %v724_v11 = vsub.f32 %v565_v8, %v695_v26  ;;  %1031 = vlog2.f32 %v551_v58 }
 0x224   : > { %742 = vst.msk [vmem:[%s1474_s9 + $0x18] sm:$0xff] %vm738_vm1, %v725_v57  ;;  %1033 = vlog2.f32 %v549_v60 }
 0x225   : > { %741 = vst.msk [vmem:[%s1474_s9 + $0x10] sm:$0xff] %vm738_vm1, %v724_v11  ;;  %v543_v7 = vpop.xlane.xlu1 %542  ;;  %v557_v12 = vpop.xlane.xlu0 %556 }
 0x226   : > { %1035 = vlog2.f32 %v543_v7 }
 0x227   : > { %v1022_v13 = vpop.eup %1021  ;;  %1037 = vlog2.f32 %v553_v10 }
 0x228   : > { %v1024_v14 = vpop.eup %1023  ;;  %v563_v63 = vmul.f32 0.6931472, %v1022_v13 }
 0x229   : > { %v561_v16 = vmul.f32 0.6931472, %v1024_v14  ;;  %v559_v15 = vpop.xlane.xlu1 %558  ;;  %v537_v18 = vpop.xlane.xlu0 %536 }
 0x22a   : > { %v723_v17 = vsub.f32 %v563_v63, %v693_v27  ;;  %1039 = vlog2.f32 %v537_v18 }
 0x22b   : > { %v722_v19 = vsub.f32 %v561_v16, %v691_v51  ;;  %1041 = vlog2.f32 %v559_v15  ;;  %v1026_v2 = vpop.eup %1025 }
 0x22c   : > { %740 = vst.msk [vmem:[%s1474_s9 + $0x8] sm:$0xff] %vm738_vm1, %v723_v17  ;;  %1043 = vlog2.f32 %v557_v12  ;;  %v1028_v28 = vpop.eup %1027  ;;  %v579_v30 = vmul.f32 0.6931472, %v1026_v2 }
 0x22d   : > { %739 = vst.msk [vmem:[%s1474_s9] sm:$0xff] %vm738_vm1, %v722_v19  ;;  %v539_v24 = vpop.xlane.xlu1 %538  ;;  %v555_v62 = vpop.xlane.xlu0 %554  ;;  %v577_v33 = vmul.f32 0.6931472, %v1028_v28 }
 0x22e   : > { %1045 = vlog2.f32 %v539_v24 }
 0x22f   : > { %1047 = vlog2.f32 %v555_v62  ;;  %v1030_v29 = vpop.eup %1029 }
 0x230   : > { %v1032_v31 = vpop.eup %1031  ;;  %v573_v32 = vmul.f32 0.6931472, %v1030_v29 }
 0x231   : > { %v709_v6 = vpop.xlane.xlu1 %708  ;;  %v1034_v34 = vpop.eup %1033  ;;  %v583_v40 = vmul.f32 0.6931472, %v1032_v31 }
 0x232   : > { %v731_v35 = vsub.f32 %v579_v30, %v709_v6  ;;  %v707_v36 = vpop.xlane.xlu0 %706  ;;  %v728_v38 = vsub.f32 %v573_v32, %v1464_v53  ;;  %v581_v42 = vmul.f32 0.6931472, %v1034_v34 }
 0x233   : > { %v1036_v37 = vpop.eup %1035  ;;  %v730_v39 = vsub.f32 %v577_v33, %v707_v36 }
 0x234   : > { %v575_v9 = vmul.f32 0.6931472, %v1036_v37  ;;  %748 = vst.msk [vmem:[%s1474_s9 + $0x48] sm:$0xff] %vm738_vm1, %v731_v35  ;;  %745 = vst.msk [vmem:[%s1474_s9 + $0x30] sm:$0xff] %vm738_vm1, %v728_v38  ;;  %v1038_v44 = vpop.eup %1037 }
 0x235   : > { %747 = vst.msk [vmem:[%s1474_s9 + $0x40] sm:$0xff] %vm738_vm1, %v730_v39  ;;  %v713_v41 = vpop.xlane.xlu1 %712  ;;  %v585_v46 = vmul.f32 0.6931472, %v1038_v44 }
 0x236   : > { %v729_v47 = vsub.f32 %v575_v9, %v1462_v52  ;;  %v733_v48 = vsub.f32 %v583_v40, %v713_v41  ;;  %v711_v50 = vpop.xlane.xlu0 %710 }
 0x237   : > { %v732_v21 = vsub.f32 %v581_v42, %v711_v50  ;;  %v1040_v20 = vpop.eup %1039 }
 0x238   : > { %746 = vst.msk [vmem:[%s1474_s9 + $0x38] sm:$0xff] %vm738_vm1, %v729_v47  ;;  %750 = vst.msk [vmem:[%s1474_s9 + $0x58] sm:$0xff] %vm738_vm1, %v733_v48  ;;  %v1042_v23 = vpop.eup %1041  ;;  %v569_v22 = vmul.f32 0.6931472, %v1040_v20 }
 0x239   : > { %749 = vst.msk [vmem:[%s1474_s9 + $0x50] sm:$0xff] %vm738_vm1, %v732_v21  ;;  %v717_v43 = vpop.xlane.xlu1 %716  ;;  %v1044_v25 = vpop.eup %1043  ;;  %v591_v56 = vmul.f32 0.6931472, %v1042_v23 }
 0x23a   : > { %v715_v26 = vpop.xlane.xlu0 %714  ;;  %v726_v51 = vsub.f32 %v569_v22, %v1468_v55  ;;  %v589_v61 = vmul.f32 0.6931472, %v1044_v25 }
 0x23b   : > { %v1046_v27 = vpop.eup %1045  ;;  %v734_v52 = vsub.f32 %v585_v46, %v715_v26 }
 0x23c   : > { %v1048_v53 = vpop.eup %1047  ;;  %v571_v45 = vmul.f32 0.6931472, %v1046_v27  ;;  %743 = vst.msk [vmem:[%s1474_s9 + $0x20] sm:$0xff] %vm738_vm1, %v726_v51 }
 0x23d   : > { %v587_v58 = vmul.f32 0.6931472, %v1048_v53  ;;  %751 = vst.msk [vmem:[%s1474_s9 + $0x60] sm:$0xff] %vm738_vm1, %v734_v52  ;;  %v721_v60 = vpop.xlane.xlu1 %720 }
 0x23e   : > { %v727_v0 = vsub.f32 %v571_v45, %v1466_v54  ;;  %v737_v1 = vsub.f32 %v591_v56, %v721_v60  ;;  %v719_v59 = vpop.xlane.xlu0 %718 }
 0x23f   : > { %v735_v3 = vsub.f32 %v587_v58, %v717_v43  ;;  %v736_v55 = vsub.f32 %v589_v61, %v719_v59 }
 0x240   : > { %744 = vst.msk [vmem:[%s1474_s9 + $0x28] sm:$0xff] %vm738_vm1, %v727_v0  ;;  %754 = vst.msk [vmem:[%s1474_s9 + $0x78] sm:$0xff] %vm738_vm1, %v737_v1 }
 0x241   : > { %752 = vst.msk [vmem:[%s1474_s9 + $0x68] sm:$0xff] %vm738_vm1, %v735_v3  ;;  %753 = vst.msk [vmem:[%s1474_s9 + $0x70] sm:$0xff] %vm738_vm1, %v736_v55 }
 0x242 PF: > { %p945_p5 = scmp.ge.s32.totalorder %s1109_s21, 2  ;;  %s793_s10 = sand.u32 1, %s1097_s18  }
 0x243   : > { %s794_s11 = scalar_lea.sflag [#allocation3], %s793_s10 }
 0x244   : > { %p942_p13 = pnand %p945_p5, %p1187_p6 }
 0x246   : > { %p943_p0 = pneg %p942_p13 }
 0x248   : > { %1092 = dma.done.wait (%p943_p0), %s794_s11, 2048  }
 0x249   : > { %1094 = vsyncadd (%p943_p0), %s794_s11, 4294965248  ;;  %p16_p1 = scmp.ge.s32.totalorder %s1170_s24, 4   ;;  %s1537_s18 = smov %s1101_s19 }
 0x24a   : > { %s1538_s19 = smov %s1105_s20  ;;  %s1539_s20 = smov %s1181_s27 }
 0x24b   : > { %s1540_s21 = smov %s1170_s24  ;;  %18 = sbr.rel (!%p16_p1) target bundleno = 3 (0x3), region = 86 }
 0x250   :  { %807 = vsyncpa [#allocation3], 1 }
 0x251   :  { %809 = vsyncpa [#allocation3 + $0x1], 1 }

</bundles_post_ra>
